<compile_context>
chip_gen: v6e
topology: v6e:2x2x1
jax: 0.10.0
libtpu: 0.0.40
codegen_flags: <defaults>
</compile_context>

<pallas_src>
import jax
import jax.numpy as jnp
from jax.experimental import pallas as pl
from jax.experimental.pallas import tpu as pltpu

TRIM_H = 28
TRIM_W = 28


def _trim_kernel(x_ref, o_ref):
    # x_ref block: (1, c_blk, h_blk, W); o_ref block: (1, c_blk, 28, 28)
    o_ref[...] = x_ref[:, :, :TRIM_H, :TRIM_W]


def trim(x, *, vmem_budget_bytes=16 * 1024 * 1024):
    """Equivalent of PyTorch `x[:, :, :28, :28]` for NCHW input."""
    N, C, H, W = x.shape
    assert H >= TRIM_H and W >= TRIM_W, "spatial dims must be >= 28"

    # Only DMA the rows we keep: smallest multiple of 8 (sublane) covering 28
    # rows is 32. If H <= 32 just take the full dim (always legal).
    h_blk = 32 if H > 32 else H

    # Block C so that the double-buffered input slab + output slab stays well
    # inside VMEM on every generation (incl. v7x's smaller VMEM).
    itemsize = jnp.dtype(x.dtype).itemsize
    per_c_bytes = 2 * (h_blk * W + TRIM_H * TRIM_W) * itemsize  # 2x = double buffer
    c_blk = int(max(1, min(C, vmem_budget_bytes // max(per_c_bytes, 1))))
    n_c_blocks = pl.cdiv(C, c_blk)

    out_shape = jax.ShapeDtypeStruct((N, C, TRIM_H, TRIM_W), x.dtype)

    return pl.pallas_call(
        _trim_kernel,
        out_shape=out_shape,
        grid=(N, n_c_blocks),
        in_specs=[
            # Last two block dims: h_blk (32, divisible by 8, or full H) and
            # full W -> satisfies the (8, 128)-or-full rule.
            pl.BlockSpec((1, c_blk, h_blk, W), lambda n, c: (n, c, 0, 0)),
        ],
        # Output last two dims equal the full output dims (28, 28) -> legal.
        out_specs=pl.BlockSpec((1, c_blk, TRIM_H, TRIM_W), lambda n, c: (n, c, 0, 0)),
        compiler_params=pltpu.CompilerParams(
            dimension_semantics=("parallel", "parallel"),
        ),
    )(x)


if __name__ == "__main__":
    key = jax.random.PRNGKey(0)

    # Primary case: small NCHW input consistent with the decoder output this
    # Trim follows (spatial slightly larger than 28).
    x = jax.random.normal(key, (2, 4, 32, 32), dtype=jnp.float32)
    y = trim(x)
    jax.block_until_ready(y)
    ref = x[:, :, :28, :28]
    assert y.shape == (2, 4, 28, 28)
    assert y.dtype == x.dtype
    assert jnp.array_equal(y, ref)

    # Extra case exercising the "don't read discarded rows" path (H, W > 32)
    # and a C count that is not a power of two.
    k2 = jax.random.PRNGKey(0)
    x2 = jax.random.normal(k2, (3, 5, 36, 36), dtype=jnp.float32)
    y2 = trim(x2)
    jax.block_until_ready(y2)
    assert jnp.array_equal(y2, x2[:, :, :28, :28])

    print("KERNEL_OK")
</pallas_src>

<mosaic_0001>
module attributes {stable_mosaic.version = 11 : i64} {
  func.func @_trim_kernel(%arg0: i32, %arg1: i32, %arg2: memref<1x4x32x32xf32, #tpu.memory_space<vmem>>, %arg3: memref<1x4x28x28xf32, #tpu.memory_space<vmem>>) attributes {dimension_semantics = [#tpu.dimension_semantics<parallel>, #tpu.dimension_semantics<parallel>], iteration_bounds = array<i64: 2, 1>, scalar_prefetch = 0 : i64, scratch_operands = 0 : i64, tpu.core_type = #tpu.core_type<tc>, window_params = [{transform_indices = @transform_0, window_bounds = array<i64: 1, 4, 32, 32>}, {transform_indices = @transform_1, window_bounds = array<i64: 1, 4, 28, 28>}]} {
    %c0 = arith.constant 0 : index
    %c0_0 = arith.constant 0 : index
    %c0_1 = arith.constant 0 : index
    %c0_2 = arith.constant 0 : index
    %0 = vector.load %arg2[%c0, %c0_0, %c0_1, %c0_2] : memref<1x4x32x32xf32, #tpu.memory_space<vmem>>, vector<1x4x28x28xf32>
    %c0_3 = arith.constant 0 : index
    %c0_4 = arith.constant 0 : index
    %c0_5 = arith.constant 0 : index
    %c0_6 = arith.constant 0 : index
    %1 = vector.load %arg3[%c0_3, %c0_4, %c0_5, %c0_6] : memref<1x4x28x28xf32, #tpu.memory_space<vmem>>, vector<1x4x28x28xf32>
    tpu.vector_store %arg3[%c0_3, %c0_4, %c0_5, %c0_6], %0 {strides = array<i32>} : memref<1x4x28x28xf32, #tpu.memory_space<vmem>>, vector<1x4x28x28xf32>,
    return
  }
  func.func @transform_0(%arg0: i32, %arg1: i32) -> (i32, i32, i32, i32) {
    %c0_i32 = arith.constant 0 : i32
    %c0_i32_0 = arith.constant 0 : i32
    %c0_i32_1 = arith.constant 0 : i32
    return %arg0, %arg1, %c0_i32, %c0_i32_0 : i32, i32, i32, i32
  }
  func.func @transform_1(%arg0: i32, %arg1: i32) -> (i32, i32, i32, i32) {
    %c0_i32 = arith.constant 0 : i32
    %c0_i32_0 = arith.constant 0 : i32
    %c0_i32_1 = arith.constant 0 : i32
    return %arg0, %arg1, %c0_i32, %c0_i32_0 : i32, i32, i32, i32
  }
}

</mosaic_0001>

<bundles_post_ra>
// kernel: tpu_custom_call.1
= control target key start
LH: loop header
LB: loop body
LE: loop exit
PB: predicated region body
PF: predicated region fallthrough
CT: control target
= control target key end

     0   :  { %6 = vsyncpa [#allocation3], 0  ;;  %s616_s0 = inlined_call_operand.hbm [shape: f32[2,4,32,32], index: 0, kind: input, shape index: {}]   ;;  %s617_s1 = inlined_call_operand.vmem [shape: f32[2,4,28,28], index: 1, kind: output, shape index: {}]  }
   0x1   :  { %8 = vsyncpa [#allocation3 + $0x1], 0  ;;  %s468_s6 = smov 0   ;;  %s470_s7 = smov 0  }
   0x2   :  { %s472_s8 = smov 0   ;;  %s474_s9 = smov 0  }
   0x3   :  { %s476_s10 = smov 0   ;;  %s478_s11 = smov 0  }
   0x4 LB: > { %s303_s12 = sadd.s32 4294967295, %s453_s11   ;;  %s26_s13 = sadd.s32 1, %s449_s10  ;;  %s453_s11 = sphi %s478_s11, %s14_s11   ;;  %s449_s10 = sphi %s476_s10, %s625_s10   ;;  %s445_s9 = sphi %s474_s9, %s624_s9   ;;  %s441_s8 = sphi %s472_s8, %s623_s8   ;;  %s437_s7 = sphi %s470_s7, %s622_s7   ;;  %s433_s6 = sphi %s468_s6, %s621_s6  }
   0x5   : > { %p28_p0 = scmp.ge.s32.totalorder %s26_s13, 2  ;;  %s35_s14 = sadd.s32 1, %s441_s8 }
   0x6   : > { %p42_p1 = scmp.ne.s32.totalorder %s441_s8, %s437_s7  ;;  %p43_p2 = scmp.eq.s32.totalorder %s453_s11, 0 }
   0x7   : > { %s627_s13 = smov (%p28_p0, %s26_s13), 0  ;;  %p48_p4 = scmp.ne.s32.totalorder %s437_s7, %s433_s6 }
   0x8   : > { %p504_p3 = por %p43_p2, %p42_p1  ;;  %s30_s16 = ssub.s32 %s449_s10, %s627_s13 }
   0x9   : > { %p49_p5 = scmp.eq.s32.totalorder %s303_s12, 0  ;;  %p33_p6 = scmp.eq.s32.totalorder %s30_s16, 0 }
   0xa   : > { %p324_p8 = scmp.lt.s32.totalorder %s453_s11, 2  ;;  %s100_s19 = sand.u32 1, %s441_s8  }
   0xb   : > { %p511_p7 = por %p49_p5, %p48_p4  ;;  %s316_s20 = sshll.u32 %s449_s10, 11 }
   0xc   : > { %s517_s18 = scalar_select %p33_p6, %s441_s8, %s35_s14  }
   0xd   : > { %s307_s21 = sshll.u32 %s100_s19, 7  ;;  %s113_s24 = scalar_lea.hbm %s616_s0, %s316_s20 }
   0xe   : > { %s104_s25 = scalar_lea.vmem [#allocation2], %s307_s21  ;;  %p526_p9 = pnand %p324_p8, %p504_p3 }
   0xf   : > { %s114_s26 = sshll.u32 %s104_s25, 4  ;;  %s101_s28 = scalar_lea.sflag [#allocation3], %s100_s19  ;;  %s115_s26 = int_to_ptr.vmem [resolvable:$true] %s114_s26 }
  0x10   : > { %p377_p10 = pneg %p526_p9  ;;  %s388_s29 = scalar_lea.vmem %s115_s26, 2048 }
  0x11   : > { %p389_p11 = scmp.ne.s32.totalorder %s115_s26, %s388_s29  ;;  %s455_s30 = smov [#allocation2]  }
  0x12   : > { %s393_s2 = sshll.u32 %s455_s30, 4  ;;  %s394_s2 = int_to_ptr.vmem [resolvable:$false] %s393_s2 }
  0x13   : > { %p391_p12 = pnand %p389_p11, %p377_p10  ;;  %s395_s3 = scalar_lea.vmem %s394_s2, 4096 }
  0x14   : > { %p396_p0 = scmp.lt.s32.totalorder %s115_s26, %s394_s2  ;;  %p397_p1 = scmp.lt.s32.totalorder %s395_s3, %s388_s29 }
  0x15   : > { %p392_p13 = pneg %p391_p12 }
  0x16   : > { %p398_p2 = por %p397_p1, %p396_p0 }
  0x18   : > { %p399_p3 = pnand %p398_p2, %p392_p13 }
  0x1a   : > { %402 = shalt.err (!%p399_p3)
}
  0x1b   : > { %s456_s4 = smov 128   ;;  %s457_s5 = smov 8  }
  0x1c   : > { %323 = dma.hbm_to_vmem [thread:$0]  (!%p526_p9), %s113_s24, 2048, %s115_s26, %s101_s28, %s456_s4, %s456_s4, %s457_s5  }
  0x1d   : > { %p310_p4 = scmp.ge.s32.totalorder %s453_s11, 1  ;;  %p122_p5 = scmp.lt.s32.totalorder %s453_s11, 3 }
  0x1f   : > { %p123_p6 = pnand %p310_p4, %p122_p5 }
  0x20   : > { %s128_s6 = sand.u32 (!%p123_p6), 1, %s437_s7  }
  0x21   : > { %126 = sbr.rel (%p123_p6) target bundleno = 52 (0x34), region = 24  ;;  %s311_s12 = sshll.u32 (!%p123_p6), %s128_s6, 7 }
  0x22   : > { %s129_s14 = scalar_lea.sflag (!%p123_p6), [#allocation3], %s128_s6  ;;  %s537_s15 = scalar_lea.vmem (!%p123_p6), [#allocation2], %s311_s12 }
  0x26   : > { %428 = dma.done.wait (%p511_p7), %s129_s14, 2048  }
  0x27   : > { %430 = vsyncadd (%p511_p7), %s129_s14, 4294965248  ;;  %p158_p8 = scmp.lt.s32.totalorder %s445_s9, 1  ;;  %vm184_vm0 = vcmask 228352   ;;  %vm188_vm1 = vcmask 224256   ;;  %v168_v0 = vld [vmem:[%s537_s15] sm:$0xff]  ;;  %v169_v1 = vld [vmem:[%s537_s15 + $0x8] sm:$0xff] }
  0x28   : > { %v170_v2 = vld [vmem:[%s537_s15 + $0x10] sm:$0xff]  ;;  %v171_v3 = vld [vmem:[%s537_s15 + $0x18] sm:$0xf]  ;;  %v172_v4 = vld [vmem:[%s537_s15 + $0x20] sm:$0xff] }
  0x29   : > { %s629_s9 = smov (!%p158_p8, %s445_s9), 1  ;;  %v173_v5 = vld [vmem:[%s537_s15 + $0x28] sm:$0xff]  ;;  %v174_v6 = vld [vmem:[%s537_s15 + $0x30] sm:$0xff]  ;;  %v175_v7 = vld [vmem:[%s537_s15 + $0x38] sm:$0xf] }
  0x2a   : > { %s317_s16 = sshll.u32 %s629_s9, 7  ;;  %v176_v8 = vld [vmem:[%s537_s15 + $0x40] sm:$0xff]  ;;  %v177_v9 = vld [vmem:[%s537_s15 + $0x48] sm:$0xff]  ;;  %v178_v10 = vld [vmem:[%s537_s15 + $0x50] sm:$0xff] }
  0x2b   : > { %s548_s21 = scalar_lea.vmem %s617_s1, %s317_s16  ;;  %v179_v11 = vld [vmem:[%s537_s15 + $0x58] sm:$0xf]  ;;  %v180_v12 = vld [vmem:[%s537_s15 + $0x60] sm:$0xff]  ;;  %v181_v13 = vld [vmem:[%s537_s15 + $0x68] sm:$0xff] }
  0x2c   : > { %185 = vst.msk [vmem:[%s548_s21] sm:$0xff] %vm184_vm0, %v168_v0  ;;  %186 = vst.msk [vmem:[%s548_s21 + $0x8] sm:$0xff] %vm184_vm0, %v169_v1  ;;  %v182_v14 = vld [vmem:[%s537_s15 + $0x70] sm:$0xff]  ;;  %v183_v15 = vld [vmem:[%s537_s15 + $0x78] sm:$0xf] }
  0x2d   : > { %187 = vst.msk [vmem:[%s548_s21 + $0x10] sm:$0xff] %vm184_vm0, %v170_v2  ;;  %190 = vst.msk [vmem:[%s548_s21 + $0x20] sm:$0xff] %vm184_vm0, %v172_v4 }
  0x2e   : > { %189 = vst.msk [vmem:[%s548_s21 + $0x18] sm:$0xf] %vm188_vm1, %v171_v3  ;;  %193 = vst.msk [vmem:[%s548_s21 + $0x38] sm:$0xf] %vm188_vm1, %v175_v7 }
  0x2f   : > { %191 = vst.msk [vmem:[%s548_s21 + $0x28] sm:$0xff] %vm184_vm0, %v173_v5  ;;  %192 = vst.msk [vmem:[%s548_s21 + $0x30] sm:$0xff] %vm184_vm0, %v174_v6 }
  0x30   : > { %194 = vst.msk [vmem:[%s548_s21 + $0x40] sm:$0xff] %vm184_vm0, %v176_v8  ;;  %195 = vst.msk [vmem:[%s548_s21 + $0x48] sm:$0xff] %vm184_vm0, %v177_v9 }
  0x31   : > { %196 = vst.msk [vmem:[%s548_s21 + $0x50] sm:$0xff] %vm184_vm0, %v178_v10  ;;  %198 = vst.msk [vmem:[%s548_s21 + $0x60] sm:$0xff] %vm184_vm0, %v180_v12 }
  0x32   : > { %197 = vst.msk [vmem:[%s548_s21 + $0x58] sm:$0xf] %vm188_vm1, %v179_v11  ;;  %201 = vst.msk [vmem:[%s548_s21 + $0x78] sm:$0xf] %vm188_vm1, %v183_v15 }
  0x33   : > { %199 = vst.msk [vmem:[%s548_s21 + $0x68] sm:$0xff] %vm184_vm0, %v181_v13  ;;  %200 = vst.msk [vmem:[%s548_s21 + $0x70] sm:$0xff] %vm184_vm0, %v182_v14 }
  0x34 PF: > { %s14_s11 = sadd.s32 1, %s453_s11   ;;  %s621_s6 = smov %s437_s7 }
  0x35   : > { %p11_p7 = scmp.ge.s32.totalorder %s14_s11, 4   ;;  %s622_s7 = smov %s441_s8 }
  0x36   : > { %s623_s8 = smov %s517_s18  ;;  %s624_s9 = smov %s449_s10 }
  0x37   : > { %s625_s10 = smov %s627_s13  ;;  %13 = sbr.rel (!%p11_p7) target bundleno = 4 (0x4), region = 64 }
  0x3c   :  { %234 = vsyncpa [#allocation3], 1 }
  0x3d   :  { %236 = vsyncpa [#allocation3 + $0x1], 1 }

</bundles_post_ra>
